<compile_context>
chip_gen: v5e
topology: v5e:2x2
jax: 0.10.0
libtpu: 0.0.40
codegen_flags: <defaults>
</compile_context>

<pallas_src>
import functools
import math

import jax
import jax.numpy as jnp
from jax.experimental import pallas as pl
from jax.experimental.pallas import tpu as pltpu

_LANES = 128

_OUT_NAMES = ('addition', 'subtraction', 'multiplication', 'division',
              'greater_than', 'less_than', 'equal_to', 'not_equal_to')


def _elementwise_kernel(x1_ref, x2_ref,
                        add_ref, sub_ref, mul_ref, div_ref,
                        gt_ref, lt_ref, eq_ref, ne_ref):
    x1 = x1_ref[...]
    x2 = x2_ref[...]

    add_ref[...] = x1 + x2
    sub_ref[...] = x1 - x2
    mul_ref[...] = x1 * x2
    # Matches torch.div(x1, torch.add(x2, 1e-05)); inputs are floating-point.
    div_ref[...] = x1 / (x2 + jnp.asarray(1e-05, x2.dtype))

    # Comparisons as int8; cast to bool fuses in the jitted wrapper.
    gt_ref[...] = (x1 > x2).astype(jnp.int8)
    lt_ref[...] = (x1 < x2).astype(jnp.int8)
    eq_ref[...] = (x1 == x2).astype(jnp.int8)
    ne_ref[...] = (x1 != x2).astype(jnp.int8)


def _device_profile():
    """Returns (tile_rows, vmem_limit_bytes_or_None, has_two_tensorcores)."""
    try:
        kind = jax.devices()[0].device_kind.lower()
    except Exception:
        kind = ""
    if "v7" in kind:
        # v7x: 32 MiB scoped / 64 MiB physical VMEM; 2 TensorCores per chip.
        return 2048, 32 * 1024 * 1024, True
    if "v6" in kind or "trillium" in kind:
        # v6e: 512 KiB f32 blocks hit ~85% of HBM BW; 2048 amortizes per-step
        # overhead; ~14 MiB double-buffered is well under 128 MiB physical.
        return 2048, 32 * 1024 * 1024, False
    # v5e (and unknown): keep the safe 16 MiB scoped-VMEM default budget.
    return 1024, None, False


def _choose_tiling(rows):
    tile_rows, vmem_limit, two_cores = _device_profile()
    if rows == 0:
        return 0, 0, vmem_limit
    if two_cores and rows >= 64:
        # Ensure >=2 blocks so the "parallel" axis shards across both TCs.
        half = -(-rows // 2)
        half = ((half + 31) // 32) * 32      # multiple of 32 sublanes
        tr = min(tile_rows, half)
    elif rows <= tile_rows:
        tr = rows                             # single block == full array dims
    else:
        tr = tile_rows
    grid_n = -(-rows // tr)
    return tr, grid_n, vmem_limit


def _build_call(rows, tr, grid_n, dtype, vmem_limit):
    slab_f = jax.ShapeDtypeStruct((rows, _LANES), dtype)
    slab_c = jax.ShapeDtypeStruct((rows, _LANES), jnp.int8)
    spec = pl.BlockSpec((tr, _LANES), lambda i: (i, 0))
    cp = dict(dimension_semantics=("parallel",))
    if vmem_limit is not None:
        cp["vmem_limit_bytes"] = vmem_limit
    return pl.pallas_call(
        _elementwise_kernel,
        out_shape=(slab_f, slab_f, slab_f, slab_f,
                   slab_c, slab_c, slab_c, slab_c),
        grid_spec=pltpu.PrefetchScalarGridSpec(
            num_scalar_prefetch=0,
            grid=(grid_n,),
            in_specs=[spec, spec],
            out_specs=[spec] * 8,
        ),
        compiler_params=pltpu.CompilerParams(**cp),
    )


@functools.lru_cache(maxsize=None)
def _make_forward(shape, dtype_name):
    dtype = jnp.dtype(dtype_name)
    shape = tuple(shape)
    total = math.prod(shape) if shape else 1
    rows = total // _LANES
    tail = total % _LANES
    prefix = rows * _LANES

    tr, grid_n, vmem_limit = _choose_tiling(rows)
    call = _build_call(rows, tr, grid_n, dtype, vmem_limit) if rows > 0 else None

    eps = jnp.asarray(1e-05, dtype)

    def _jnp_compute(a, b):
        return (a + b, a - b, a * b, a / (b + eps),
                a > b, a < b, a == b, a != b)

    def forward(x1, x2):
        x1f = x1.reshape(total)
        x2f = x2.reshape(total)

        kparts = None
        if rows > 0:
            a = x1f[:prefix].reshape(rows, _LANES)
            b = x2f[:prefix].reshape(rows, _LANES)
            outs = call(a, b)
            kparts = [o.reshape(prefix) for o in outs[:4]]
            kparts += [o.reshape(prefix).astype(jnp.bool_) for o in outs[4:]]

        tparts = None
        if tail > 0:
            tparts = list(_jnp_compute(x1f[prefix:], x2f[prefix:]))

        if kparts is not None and tparts is not None:
            parts = [jnp.concatenate([k, t]) for k, t in zip(kparts, tparts)]
        elif kparts is not None:
            parts = kparts
        else:
            parts = tparts

        return {n: p.reshape(shape) for n, p in zip(_OUT_NAMES, parts)}

    return jax.jit(forward)


def pt_module_forward(x1, x2):
    assert x1.shape == x2.shape and x1.dtype == x2.dtype
    assert jnp.issubdtype(x1.dtype, jnp.floating), (
        "PtModule division semantics (x2 + 1e-05) require floating-point inputs")
    fwd = _make_forward(tuple(x1.shape), str(jnp.dtype(x1.dtype)))
    return fwd(x1, x2)


def _check(out, x1, x2):
    assert jnp.allclose(out['addition'], x1 + x2)
    assert jnp.allclose(out['subtraction'], x1 - x2)
    assert jnp.allclose(out['multiplication'], x1 * x2)
    assert jnp.allclose(out['division'], x1 / (x2 + 1e-05))
    for k in ('greater_than', 'less_than', 'equal_to', 'not_equal_to'):
        assert out[k].dtype == jnp.bool_
    assert jnp.array_equal(out['greater_than'], x1 > x2)
    assert jnp.array_equal(out['less_than'], x1 < x2)
    assert jnp.array_equal(out['equal_to'], x1 == x2)
    assert jnp.array_equal(out['not_equal_to'], x1 != x2)


if __name__ == "__main__":
    key = jax.random.PRNGKey(0)
    k1, k2, k3, k4 = jax.random.split(key, 4)

    # Main test: NCHW shape, total elements a multiple of 128 (pure kernel path).
    shape = (2, 4, 16, 16)
    x1 = jax.random.normal(k1, shape, dtype=jnp.float32)
    x2 = jax.random.normal(k2, shape, dtype=jnp.float32)
    # Force some exact equalities so equal_to / not_equal_to are exercised.
    x2 = x2.at[0, 0, 0, :].set(x1[0, 0, 0, :])

    out = pt_module_forward(x1, x2)
    jax.block_until_ready(out)
    _check(out, x1, x2)

    # Secondary test: ragged element count (462 = 3*128 + 78) exercising the
    # kernel-prefix + jnp-tail path, with no pad/slice round-trip.
    shape2 = (2, 3, 7, 11)
    y1 = jax.random.normal(k3, shape2, dtype=jnp.float32)
    y2 = jax.random.normal(k4, shape2, dtype=jnp.float32)
    out2 = pt_module_forward(y1, y2)
    jax.block_until_ready(out2)
    _check(out2, y1, y2)

    print("KERNEL_OK")
</pallas_src>

<mosaic_0001>
module attributes {stable_mosaic.version = 11 : i64} {
  func.func @_elementwise_kernel(%arg0: i32, %arg1: memref<16x128xf32, #tpu.memory_space<vmem>>, %arg2: memref<16x128xf32, #tpu.memory_space<vmem>>, %arg3: memref<16x128xf32, #tpu.memory_space<vmem>>, %arg4: memref<16x128xf32, #tpu.memory_space<vmem>>, %arg5: memref<16x128xf32, #tpu.memory_space<vmem>>, %arg6: memref<16x128xf32, #tpu.memory_space<vmem>>, %arg7: memref<16x128xi8, #tpu.memory_space<vmem>>, %arg8: memref<16x128xi8, #tpu.memory_space<vmem>>, %arg9: memref<16x128xi8, #tpu.memory_space<vmem>>, %arg10: memref<16x128xi8, #tpu.memory_space<vmem>>) attributes {dimension_semantics = [#tpu.dimension_semantics<parallel>], iteration_bounds = array<i64: 1>, scalar_prefetch = 0 : i64, scratch_operands = 0 : i64, tpu.core_type = #tpu.core_type<tc>, window_params = [{transform_indices = @transform_0, window_bounds = array<i64: 16, 128>}, {transform_indices = @transform_1, window_bounds = array<i64: 16, 128>}, {transform_indices = @transform_2, window_bounds = array<i64: 16, 128>}, {transform_indices = @transform_3, window_bounds = array<i64: 16, 128>}, {transform_indices = @transform_4, window_bounds = array<i64: 16, 128>}, {transform_indices = @transform_5, window_bounds = array<i64: 16, 128>}, {transform_indices = @transform_6, window_bounds = array<i64: 16, 128>}, {transform_indices = @transform_7, window_bounds = array<i64: 16, 128>}, {transform_indices = @transform_8, window_bounds = array<i64: 16, 128>}, {transform_indices = @transform_9, window_bounds = array<i64: 16, 128>}]} {
    %c0 = arith.constant 0 : index
    %c0_0 = arith.constant 0 : index
    %0 = vector.load %arg1[%c0, %c0_0] : memref<16x128xf32, #tpu.memory_space<vmem>>, vector<16x128xf32>
    %c0_1 = arith.constant 0 : index
    %c0_2 = arith.constant 0 : index
    %1 = vector.load %arg2[%c0_1, %c0_2] : memref<16x128xf32, #tpu.memory_space<vmem>>, vector<16x128xf32>
    %2 = arith.addf %0, %1 : vector<16x128xf32>
    %c0_3 = arith.constant 0 : index
    %c0_4 = arith.constant 0 : index
    %3 = vector.load %arg3[%c0_3, %c0_4] : memref<16x128xf32, #tpu.memory_space<vmem>>, vector<16x128xf32>
    tpu.vector_store %arg3[%c0_3, %c0_4], %2 {strides = array<i32>} : memref<16x128xf32, #tpu.memory_space<vmem>>, vector<16x128xf32>,
    %4 = arith.subf %0, %1 : vector<16x128xf32>
    %c0_5 = arith.constant 0 : index
    %c0_6 = arith.constant 0 : index
    %5 = vector.load %arg4[%c0_5, %c0_6] : memref<16x128xf32, #tpu.memory_space<vmem>>, vector<16x128xf32>
    tpu.vector_store %arg4[%c0_5, %c0_6], %4 {strides = array<i32>} : memref<16x128xf32, #tpu.memory_space<vmem>>, vector<16x128xf32>,
    %6 = arith.mulf %0, %1 : vector<16x128xf32>
    %c0_7 = arith.constant 0 : index
    %c0_8 = arith.constant 0 : index
    %7 = vector.load %arg5[%c0_7, %c0_8] : memref<16x128xf32, #tpu.memory_space<vmem>>, vector<16x128xf32>
    tpu.vector_store %arg5[%c0_7, %c0_8], %6 {strides = array<i32>} : memref<16x128xf32, #tpu.memory_space<vmem>>, vector<16x128xf32>,
    %cst = arith.constant 9.99999974E-6 : f32
    %8 = vector.broadcast %cst : f32 to vector<16x128xf32>
    %9 = arith.addf %1, %8 : vector<16x128xf32>
    %10 = arith.divf %0, %9 : vector<16x128xf32>
    %c0_9 = arith.constant 0 : index
    %c0_10 = arith.constant 0 : index
    %11 = vector.load %arg6[%c0_9, %c0_10] : memref<16x128xf32, #tpu.memory_space<vmem>>, vector<16x128xf32>
    tpu.vector_store %arg6[%c0_9, %c0_10], %10 {strides = array<i32>} : memref<16x128xf32, #tpu.memory_space<vmem>>, vector<16x128xf32>,
    %12 = arith.cmpf ogt, %0, %1 : vector<16x128xf32>
    %13 = arith.extui %12 : vector<16x128xi1> to vector<16x128xi8>
    %c0_11 = arith.constant 0 : index
    %c0_12 = arith.constant 0 : index
    %14 = vector.load %arg7[%c0_11, %c0_12] : memref<16x128xi8, #tpu.memory_space<vmem>>, vector<16x128xi8>
    tpu.vector_store %arg7[%c0_11, %c0_12], %13 {strides = array<i32>} : memref<16x128xi8, #tpu.memory_space<vmem>>, vector<16x128xi8>,
    %15 = arith.cmpf olt, %0, %1 : vector<16x128xf32>
    %16 = arith.extui %15 : vector<16x128xi1> to vector<16x128xi8>
    %c0_13 = arith.constant 0 : index
    %c0_14 = arith.constant 0 : index
    %17 = vector.load %arg8[%c0_13, %c0_14] : memref<16x128xi8, #tpu.memory_space<vmem>>, vector<16x128xi8>
    tpu.vector_store %arg8[%c0_13, %c0_14], %16 {strides = array<i32>} : memref<16x128xi8, #tpu.memory_space<vmem>>, vector<16x128xi8>,
    %18 = arith.cmpf oeq, %0, %1 : vector<16x128xf32>
    %19 = arith.extui %18 : vector<16x128xi1> to vector<16x128xi8>
    %c0_15 = arith.constant 0 : index
    %c0_16 = arith.constant 0 : index
    %20 = vector.load %arg9[%c0_15, %c0_16] : memref<16x128xi8, #tpu.memory_space<vmem>>, vector<16x128xi8>
    tpu.vector_store %arg9[%c0_15, %c0_16], %19 {strides = array<i32>} : memref<16x128xi8, #tpu.memory_space<vmem>>, vector<16x128xi8>,
    %21 = arith.cmpf one, %0, %1 : vector<16x128xf32>
    %22 = arith.extui %21 : vector<16x128xi1> to vector<16x128xi8>
    %c0_17 = arith.constant 0 : index
    %c0_18 = arith.constant 0 : index
    %23 = vector.load %arg10[%c0_17, %c0_18] : memref<16x128xi8, #tpu.memory_space<vmem>>, vector<16x128xi8>
    tpu.vector_store %arg10[%c0_17, %c0_18], %22 {strides = array<i32>} : memref<16x128xi8, #tpu.memory_space<vmem>>, vector<16x128xi8>,
    return
  }
  func.func @transform_0(%arg0: i32) -> (i32, i32) {
    %c0_i32 = arith.constant 0 : i32
    %c0_i32_0 = arith.constant 0 : i32
    return %arg0, %c0_i32 : i32, i32
  }
  func.func @transform_1(%arg0: i32) -> (i32, i32) {
    %c0_i32 = arith.constant 0 : i32
    %c0_i32_0 = arith.constant 0 : i32
    return %arg0, %c0_i32 : i32, i32
  }
  func.func @transform_2(%arg0: i32) -> (i32, i32) {
    %c0_i32 = arith.constant 0 : i32
    %c0_i32_0 = arith.constant 0 : i32
    return %arg0, %c0_i32 : i32, i32
  }
  func.func @transform_3(%arg0: i32) -> (i32, i32) {
    %c0_i32 = arith.constant 0 : i32
    %c0_i32_0 = arith.constant 0 : i32
    return %arg0, %c0_i32 : i32, i32
  }
  func.func @transform_4(%arg0: i32) -> (i32, i32) {
    %c0_i32 = arith.constant 0 : i32
    %c0_i32_0 = arith.constant 0 : i32
    return %arg0, %c0_i32 : i32, i32
  }
  func.func @transform_5(%arg0: i32) -> (i32, i32) {
    %c0_i32 = arith.constant 0 : i32
    %c0_i32_0 = arith.constant 0 : i32
    return %arg0, %c0_i32 : i32, i32
  }
  func.func @transform_6(%arg0: i32) -> (i32, i32) {
    %c0_i32 = arith.constant 0 : i32
    %c0_i32_0 = arith.constant 0 : i32
    return %arg0, %c0_i32 : i32, i32
  }
  func.func @transform_7(%arg0: i32) -> (i32, i32) {
    %c0_i32 = arith.constant 0 : i32
    %c0_i32_0 = arith.constant 0 : i32
    return %arg0, %c0_i32 : i32, i32
  }
  func.func @transform_8(%arg0: i32) -> (i32, i32) {
    %c0_i32 = arith.constant 0 : i32
    %c0_i32_0 = arith.constant 0 : i32
    return %arg0, %c0_i32 : i32, i32
  }
  func.func @transform_9(%arg0: i32) -> (i32, i32) {
    %c0_i32 = arith.constant 0 : i32
    %c0_i32_0 = arith.constant 0 : i32
    return %arg0, %c0_i32 : i32, i32
  }
}

</mosaic_0001>

<bundles_post_ra>
// kernel: forward.1
= control target key start
LH: loop header
LB: loop body
LE: loop exit
PB: predicated region body
PF: predicated region fallthrough
CT: control target
= control target key end

     0   :  { %v172_v16 = vmov 0   ;;  %s387_s0 = inlined_call_operand.vmem [shape: f32[16,128], index: 0, kind: input, shape index: {}]   ;;  %s388_s1 = inlined_call_operand.vmem [shape: f32[16,128], index: 1, kind: input, shape index: {}]   ;;  %s389_s2 = inlined_call_operand.vmem [shape: f32[16,128], index: 2, kind: output, shape index: {0}]   ;;  %s390_s3 = inlined_call_operand.vmem [shape: f32[16,128], index: 3, kind: output, shape index: {1}]   ;;  %s391_s4 = inlined_call_operand.vmem [shape: f32[16,128], index: 4, kind: output, shape index: {2}]   ;;  %s392_s6 = inlined_call_operand.vmem [shape: s8[16,128], index: 6, kind: output, shape index: {4}]   ;;  %s393_s7 = inlined_call_operand.vmem [shape: s8[16,128], index: 7, kind: output, shape index: {5}]   ;;  %s394_s5 = inlined_call_operand.vmem [shape: f32[16,128], index: 5, kind: output, shape index: {3}]   ;;  %s395_s8 = inlined_call_operand.vmem [shape: s8[16,128], index: 8, kind: output, shape index: {6}]   ;;  %s396_s9 = inlined_call_operand.vmem [shape: s8[16,128], index: 9, kind: output, shape index: {7}]  }
   0x1   :  { %v226_v0 = vld [vmem:[%s387_s0] sm:$0xff]  ;;  %v238_v3 = vld [vmem:[%s387_s0 + $0x8] sm:$0xff] }
   0x2   :  { %v231_v1 = vld [vmem:[%s388_s1] sm:$0xff]  ;;  %v243_v4 = vld [vmem:[%s388_s1 + $0x8] sm:$0xff] }
   0x3   :  { %v25_v2 = vadd.f32 %v231_v1, %v226_v0  ;;  %v29_v5 = vsub.f32 %v226_v0, %v231_v1  ;;  %v248_v6 = vadd.f32 1e-05, %v231_v1  ;;  %v26_v7 = vadd.f32 %v243_v4, %v238_v3 }
   0x4   :  { %v30_v8 = vsub.f32 %v238_v3, %v243_v4  ;;  %v255_v9 = vadd.f32 1e-05, %v243_v4  ;;  %v33_v10 = vmul.f32 %v231_v1, %v226_v0  ;;  %v34_v11 = vmul.f32 %v243_v4, %v238_v3 }
   0x5   :  { %27 = vst [vmem:[%s389_s2] sm:$0xff] %v25_v2  ;;  %168 = vrcp.f32 %v248_v6  ;;  %v48_v12 = vand.u32 2147483647, %v248_v6  ;;  %v50_v13 = vand.u32 2147483648, %v248_v6  ;;  %vm71_vm0 = vcmp.gt.f32.partialorder %v226_v0, %v231_v1 }
   0x6   :  { %28 = vst [vmem:[%s389_s2 + $0x8] sm:$0xff] %v26_v7  ;;  %170 = vrcp.f32 %v255_v9  ;;  %v65_v14 = vand.u32 2147483648, %v255_v9  ;;  %v63_v15 = vand.u32 2147483647, %v255_v9  ;;  %vm72_vm1 = vcmp.gt.f32.partialorder %v238_v3, %v243_v4 }
   0x7   :  { %31 = vst [vmem:[%s390_s3] sm:$0xff] %v29_v5  ;;  %vm44_vm2 = vweird.f32 %v248_v6  ;;  %vm73_vm3 = vmpackc.low %vm72_vm1, %vm71_vm0  ;;  %vm87_vm4 = vcmp.lt.f32.partialorder %v226_v0, %v231_v1  ;;  %vm88_vm5 = vcmp.lt.f32.partialorder %v238_v3, %v243_v4  ;;  %vm59_vm6 = vweird.f32 %v255_v9 }
   0x8   :  { %32 = vst [vmem:[%s390_s3 + $0x8] sm:$0xff] %v30_v8  ;;  %v74_v17 = vsel %vm73_vm3, 16711935, %v172_v16  ;;  %vm89_vm7 = vmpackc.low %vm88_vm5, %vm87_vm4  ;;  %vm103_vm8 = vcmp.eq.f32.partialorder %v226_v0, %v231_v1  ;;  %vm104_vm9 = vcmp.eq.f32.partialorder %v238_v3, %v243_v4  ;;  %vm300_vm10 = vcmp.eq.f32.partialorder %v48_v12, 8.507059e+37 }
   0x9   :  { %35 = vst [vmem:[%s391_s4] sm:$0xff] %v33_v10  ;;  %v51_v19 = vor.u32 1.1754944e-38, %v50_v13  ;;  %v66_v20 = vor.u32 1.1754944e-38, %v65_v14  ;;  %v76_v21 = vpack.c.b8 %v74_v17, %v74_v17  ;;  %v90_v22 = vsel %vm89_vm7, 16711935, %v172_v16  ;;  %vm105_vm11 = vmpackc.low %vm104_vm9, %vm103_vm8 }
   0xa   :  { %36 = vst [vmem:[%s391_s4 + $0x8] sm:$0xff] %v34_v11  ;;  %vm305_vm12 = vcmp.eq.f32.partialorder %v63_v15, 8.507059e+37  ;;  %v92_v25 = vpack.c.b8 %v90_v22, %v90_v22  ;;  %v106_v26 = vsel %vm105_vm11, 16711935, %v172_v16  ;;  %vm119_vm13 = vcmp.ne.f32.partialorder %v226_v0, %v231_v1 }
   0xb   :  { %v169_v23 = vpop.eup %168  ;;  %vm120_vm14 = vcmp.ne.f32.partialorder %v238_v3, %v243_v4  ;;  %vm77_vm0 = vnez %v76_v21  ;;  %v108_v29 = vpack.c.b8 %v106_v26, %v106_v26 }
   0xc   :  { %v171_v27 = vpop.eup %170  ;;  %v40_v28 = vmul.f32 %v169_v23, %v248_v6  ;;  %vm45_vm15 = vweird.f32 %v169_v23  ;;  %v78_v31 = vsel %vm77_vm0, 16843009, %v172_v16  ;;  %vm93_vm3 = vnez %v92_v25  ;;  %vm325_vm5 = vmpackc.low %vm120_vm14, %vm119_vm13 }
   0xd   :  { %v55_v30 = vmul.f32 %v171_v27, %v255_v9  ;;  %vm60_vm1 = vweird.f32 %v171_v27  ;;  %v79_v33 = vunpack.c.0.s8 %v78_v31  ;;  %v80_v34 = vunpack.c.1.s8 %v78_v31  ;;  %vm332_vm7 = vmor %vm44_vm2, %vm45_vm15 }
   0xe   :  { %v41_v32 = vsub.f32 1.0, %v40_v28  ;;  %v94_v35 = vsel %vm93_vm3, 16843009, %v172_v16  ;;  %vm109_vm4 = vnez %v108_v29  ;;  %vm339_vm8 = vmor %vm59_vm6, %vm60_vm1  ;;  %v122_v60 = vsel %vm325_vm5, 16711935, %v172_v16 }
   0xf   :  { %v56_v36 = vsub.f32 1.0, %v55_v30  ;;  %v95_v37 = vunpack.c.0.s8 %v94_v35  ;;  %v96_v38 = vunpack.c.1.s8 %v94_v35  ;;  %v81_v40 = vpack.c.b16 %v79_v33, %v79_v33 }
  0x10   :  { %v42_v39 = vmul.f32 %v169_v23, %v41_v32  ;;  %v83_v41 = vpack.c.b16 %v80_v34, %v80_v34  ;;  %v110_v42 = vsel %vm109_vm4, 16843009, %v172_v16  ;;  %v124_v63 = vpack.c.b8 %v122_v60, %v122_v60 }
  0x11   :  { %v57_v45 = vmul.f32 %v171_v27, %v56_v36  ;;  %v97_v46 = vpack.c.b16 %v95_v37, %v95_v37  ;;  %v99_v47 = vpack.c.b16 %v96_v38, %v96_v38  ;;  %v111_v48 = vunpack.c.0.s8 %v110_v42 }
  0x12   :  { %v43_v49 = vadd.f32 %v169_v23, %v42_v39  ;;  %v82_v51 = vpack.c.b8 %v81_v40, %v81_v40  ;;  %v84_v52 = vpack.c.b8 %v83_v41, %v83_v41  ;;  %v112_v53 = vunpack.c.1.s8 %v110_v42 }
  0x13   :  { %v58_v54 = vadd.f32 %v171_v27, %v57_v45  ;;  %v98_v55 = vpack.c.b8 %v97_v46, %v97_v46  ;;  %v100_v56 = vpack.c.b8 %v99_v47, %v99_v47  ;;  %v113_v57 = vpack.c.b16 %v111_v48, %v111_v48 }
  0x14   :  { %v47_v58 = vsel %vm332_vm7, %v169_v23, %v43_v49  ;;  %85 = vst [vmem:[%s392_s6] sm:$0x3] %v82_v51  ;;  %v115_v59 = vpack.c.b16 %v112_v53, %v112_v53  ;;  %vm125_vm2 = vnez %v124_v63 }
  0x15   :  { %v52_v61 = vsel %vm300_vm10, %v51_v19, %v47_v58  ;;  %v62_v62 = vsel %vm339_vm8, %v171_v27, %v58_v54  ;;  %86 = vst [vmem:[%s392_s6 + $0x2] sm:$0x3] %v84_v52  ;;  %v114_v4 = vpack.c.b8 %v113_v57, %v113_v57 }
  0x16   :  { %v53_v1 = vmul.f32 %v52_v61, %v226_v0  ;;  %v67_v2 = vsel %vm305_vm12, %v66_v20, %v62_v62  ;;  %101 = vst [vmem:[%s393_s7] sm:$0x3] %v98_v55  ;;  %v116_v6 = vpack.c.b8 %v115_v59, %v115_v59  ;;  %v126_v0 = vsel %vm125_vm2, 16843009, %v172_v16 }
  0x17   :  { %v68_v5 = vmul.f32 %v67_v2, %v238_v3  ;;  %102 = vst [vmem:[%s393_s7 + $0x2] sm:$0x3] %v100_v56  ;;  %v127_v7 = vunpack.c.0.s8 %v126_v0  ;;  %v128_v8 = vunpack.c.1.s8 %v126_v0 }
  0x18   :  { %69 = vst [vmem:[%s394_s5] sm:$0xff] %v53_v1 }
  0x19   :  { %70 = vst [vmem:[%s394_s5 + $0x8] sm:$0xff] %v68_v5  ;;  %v129_v3 = vpack.c.b16 %v127_v7, %v127_v7  ;;  %v131_v9 = vpack.c.b16 %v128_v8, %v128_v8 }
  0x1a   :  { %117 = vst [vmem:[%s395_s8] sm:$0x3] %v114_v4 }
  0x1b   :  { %118 = vst [vmem:[%s395_s8 + $0x2] sm:$0x3] %v116_v6  ;;  %v130_v10 = vpack.c.b8 %v129_v3, %v129_v3  ;;  %v132_v11 = vpack.c.b8 %v131_v9, %v131_v9 }
  0x1d   :  { %133 = vst [vmem:[%s396_s9] sm:$0x3] %v130_v10 }
  0x1e   :  { %134 = vst [vmem:[%s396_s9 + $0x2] sm:$0x3] %v132_v11 }

</bundles_post_ra>
